<compile_context>
chip_gen: v7x
topology: tpu7x:2x2x1
jax: 0.10.0
libtpu: 0.0.40
codegen_flags: <defaults>
</compile_context>

<pallas_src>
import functools

import jax
import jax.numpy as jnp
from jax.experimental import pallas as pl
from jax.experimental.pallas import tpu as pltpu


def pack_discriminator_params(params, n_langs):
    """One-time (per weight update) packing of the synthetic submodule params.

    Folds the linear pooler into the first discriminator layer and packs the
    result into a single bf16 weight slab + a single f32 bias slab.
    """
    wm, bm, w1, b1, w2, b2 = params
    H = wm.shape[0]
    c_pad = max(128, pl.cdiv(n_langs, 128) * 128)
    P = max(H, c_pad)

    # Exact fold (f32): tanh((x@Wm+bm)@W1+b1) == tanh(x@(Wm@W1) + (bm@W1+b1))
    w1f = wm @ w1                      # (H, H)
    b1f = bm @ w1 + b1                 # (H,)

    # Padded second layer: zero-pad W2 cols; pad b2 with -1e9 so padded class
    # lanes are numerically inert in max/lse (bias slab stays f32).
    w2p = jnp.zeros((H, c_pad), jnp.float32).at[:, :n_langs].set(w2)
    b2p = jnp.full((c_pad,), -1e9, jnp.float32).at[:n_langs].set(b2)

    # Single bf16 weight slab (2H, P) and single f32 bias slab (2, P).
    w_slab = (jnp.zeros((2 * H, P), jnp.float32)
              .at[0:H, :H].set(w1f)
              .at[H:2 * H, :c_pad].set(w2p)).astype(jnp.bfloat16)
    bias_slab = (jnp.zeros((2, P), jnp.float32)
                 .at[0, :H].set(b1f)
                 .at[1, :c_pad].set(b2p))

    meta = dict(H=H, c_pad=c_pad, P=P, n_langs=n_langs)
    return w_slab, bias_slab, meta


@functools.partial(jax.jit, static_argnames=("H", "c_pad", "P"))
def _discriminator_loss_packed(src_embed, tgt_embed, src_lbl, tgt_lbl,
                               w_slab, bias_slab, *, H, c_pad, P):
    B = src_embed.shape[0]
    rows = 2 * B
    inv_b = 1.0 / float(B)

    # Per-call glue: src/tgt fusion + label concat only.
    x = jnp.concatenate([src_embed, tgt_embed], axis=0).astype(jnp.bfloat16)
    labels = jnp.concatenate([src_lbl, tgt_lbl],
                             axis=0).astype(jnp.int32).reshape(rows, 1)

    def kernel(x_ref, lbl_ref, w_ref, bias_ref, out_ref):
        w1 = w_ref[0:H, 0:H]            # (H, H) bf16, folded pooler+layer1
        w2 = w_ref[H:2 * H, 0:c_pad]    # (H, c_pad) bf16
        b1 = bias_ref[0:1, 0:H]         # (1, H) f32
        b2 = bias_ref[1:2, 0:c_pad]     # (1, c_pad) f32, -1e9 on padded lanes

        # fused pooler + layer1: bf16 operands, f32 accumulation, f32 tanh
        h = jnp.tanh(jnp.dot(x_ref[...], w1,
                             preferred_element_type=jnp.float32) + b1)
        # layer2 -> lane-dense padded language logits (f32)
        logits = jnp.dot(h.astype(jnp.bfloat16), w2,
                         preferred_element_type=jnp.float32) + b2

        # numerically stable lse over 128 lane-dense classes
        # (padded classes carry -1e9 bias -> exp() == 0, numerically inert)
        m = jnp.max(logits, axis=-1, keepdims=True)
        lse = m + jnp.log(jnp.sum(jnp.exp(logits - m), axis=-1, keepdims=True))

        # gather label logits without materializing logp / one-hot
        iota = jax.lax.broadcasted_iota(jnp.int32, (rows, c_pad), 1)
        picked = jnp.where(iota == lbl_ref[...], logits, 0.0)

        # CE(src) + CE(tgt) = (sum of all per-row NLLs) / B
        out_ref[0, 0] = (jnp.sum(lse) - jnp.sum(picked)) * inv_b

    vmem = pl.BlockSpec(memory_space=pltpu.MemorySpace.VMEM)

    bytes_accessed = (x.size * 2 + labels.size * 4 +
                      w_slab.size * 2 + bias_slab.size * 4 + 4)
    flops = 2 * rows * H * (H + c_pad)
    transcendentals = rows * (H + c_pad)

    out = pl.pallas_call(
        kernel,
        out_shape=jax.ShapeDtypeStruct((1, 1), jnp.float32),
        in_specs=[vmem] * 4,
        out_specs=pl.BlockSpec(memory_space=pltpu.MemorySpace.SMEM),
        compiler_params=pltpu.CompilerParams(vmem_limit_bytes=1 * 1024 * 1024),
        cost_estimate=pl.CostEstimate(flops=flops,
                                      transcendentals=transcendentals,
                                      bytes_accessed=bytes_accessed),
    )(x, labels, w_slab, bias_slab)
    return out[0, 0]


def discriminator_loss(src_embed, tgt_embed, src_lang_label, tgt_lang_label,
                       packed):
    """Forward pass of DiscriminatorLoss with pre-packed params."""
    w_slab, bias_slab, meta = packed
    return _discriminator_loss_packed(
        src_embed, tgt_embed, src_lang_label, tgt_lang_label,
        w_slab, bias_slab, H=meta["H"], c_pad=meta["c_pad"], P=meta["P"])


def _reference(src_embed, tgt_embed, src_lbl, tgt_lbl, params, n_langs):
    wm, bm, w1, b1, w2, b2 = params

    def branch(x, lbl):
        meaning = x @ wm + bm
        logits = jnp.tanh(meaning @ w1 + b1) @ w2 + b2
        logp = jax.nn.log_softmax(logits, axis=-1)
        return -jnp.mean(jnp.take_along_axis(logp, lbl[:, None], axis=-1))

    return branch(src_embed, src_lbl) + branch(tgt_embed, tgt_lbl)


if __name__ == "__main__":
    B, H, N_LANGS = 8, 128, 8

    key = jax.random.PRNGKey(0)
    ks = jax.random.split(key, 10)

    # deterministic synthetic parameters
    wm = jax.random.normal(ks[0], (H, H), jnp.float32) * 0.02
    bm = jax.random.normal(ks[1], (H,), jnp.float32) * 0.02
    w1 = jax.random.normal(ks[2], (H, H), jnp.float32) * 0.02
    b1 = jax.random.normal(ks[3], (H,), jnp.float32) * 0.02
    w2 = jax.random.normal(ks[4], (H, N_LANGS), jnp.float32) * 0.02
    b2 = jax.random.normal(ks[5], (N_LANGS,), jnp.float32) * 0.02
    params = (wm, bm, w1, b1, w2, b2)

    # deterministic example inputs (src/tgt sentence embeddings + lang labels)
    src_embed = jax.random.normal(ks[6], (B, H), jnp.float32)
    tgt_embed = jax.random.normal(ks[7], (B, H), jnp.float32)
    src_lbl = jax.random.randint(ks[8], (B,), 0, N_LANGS, dtype=jnp.int32)
    tgt_lbl = jax.random.randint(ks[9], (B,), 0, N_LANGS, dtype=jnp.int32)

    # One-time packing (cache across microbatches / eval steps per weight update).
    packed = pack_discriminator_params(params, N_LANGS)

    loss = discriminator_loss(src_embed, tgt_embed, src_lbl, tgt_lbl, packed)
    loss = jax.block_until_ready(loss)

    # f32 reference; tolerance loosened for the bf16 matmul-operand cast.
    ref = _reference(src_embed, tgt_embed, src_lbl, tgt_lbl, params, N_LANGS)
    assert jnp.allclose(loss, ref, rtol=1e-2, atol=1e-2), (loss, ref)

    print("KERNEL_OK")
</pallas_src>

<mosaic_0001>
module attributes {stable_mosaic.version = 11 : i64} {
  func.func @kernel(%arg0: memref<16x128xbf16, #tpu.memory_space<vmem>>, %arg1: memref<16x1xi32, #tpu.memory_space<vmem>>, %arg2: memref<256x128xbf16, #tpu.memory_space<vmem>>, %arg3: memref<2x128xf32, #tpu.memory_space<vmem>>, %arg4: memref<1x1xf32, #tpu.memory_space<smem>>) attributes {dimension_semantics = [], scalar_prefetch = 0 : i64, scratch_operands = 0 : i64, tpu.core_type = #tpu.core_type<tc>} {
    %c0 = arith.constant 0 : index
    %c0_0 = arith.constant 0 : index
    %0 = vector.load %arg2[%c0, %c0_0] : memref<256x128xbf16, #tpu.memory_space<vmem>>, vector<128x128xbf16>
    %c128 = arith.constant 128 : index
    %c0_1 = arith.constant 0 : index
    %1 = vector.load %arg2[%c128, %c0_1] : memref<256x128xbf16, #tpu.memory_space<vmem>>, vector<128x128xbf16>
    %c0_2 = arith.constant 0 : index
    %c0_3 = arith.constant 0 : index
    %2 = vector.load %arg3[%c0_2, %c0_3] : memref<2x128xf32, #tpu.memory_space<vmem>>, vector<1x128xf32>
    %c1 = arith.constant 1 : index
    %c0_4 = arith.constant 0 : index
    %3 = vector.load %arg3[%c1, %c0_4] : memref<2x128xf32, #tpu.memory_space<vmem>>, vector<1x128xf32>
    %c0_5 = arith.constant 0 : index
    %c0_6 = arith.constant 0 : index
    %4 = vector.load %arg0[%c0_5, %c0_6] : memref<16x128xbf16, #tpu.memory_space<vmem>>, vector<16x128xbf16>
    %cst = arith.constant dense<0.000000e+00> : vector<16x128xf32>
    %5 = tpu.matmul %4, %0, %cst {dimension_numbers = #tpu.dot_dimension_numbers<[1], [0], [0], [1], [0, 0, 1, 1], [], []>} : vector<16x128xbf16>, vector<128x128xbf16>, vector<16x128xf32> -> vector<16x128xf32>
    %6 = vector.broadcast %2 : vector<1x128xf32> to vector<16x128xf32>
    %7 = arith.addf %5, %6 : vector<16x128xf32>
    %8 = math.tanh %7 : vector<16x128xf32>
    %9 = arith.truncf %8 : vector<16x128xf32> to vector<16x128xbf16>
    %cst_7 = arith.constant dense<0.000000e+00> : vector<16x128xf32>
    %10 = tpu.matmul %9, %1, %cst_7 {dimension_numbers = #tpu.dot_dimension_numbers<[1], [0], [0], [1], [0, 0, 1, 1], [], []>} : vector<16x128xbf16>, vector<128x128xbf16>, vector<16x128xf32> -> vector<16x128xf32>
    %11 = vector.broadcast %3 : vector<1x128xf32> to vector<16x128xf32>
    %12 = arith.addf %10, %11 : vector<16x128xf32>
    %cst_8 = arith.constant dense<0xFF800000> : vector<16xf32>
    %13 = vector.multi_reduction <maximumf>, %12, %cst_8 [1] : vector<16x128xf32> to vector<16xf32>
    %14 = vector.shape_cast %13 : vector<16xf32> to vector<16x1xf32>
    %15 = vector.broadcast %14 : vector<16x1xf32> to vector<16x128xf32>
    %16 = arith.subf %12, %15 : vector<16x128xf32>
    %17 = math.exp %16 : vector<16x128xf32>
    %cst_9 = arith.constant dense<0.000000e+00> : vector<16xf32>
    %18 = vector.multi_reduction <add>, %17, %cst_9 [1] : vector<16x128xf32> to vector<16xf32>
    %19 = vector.shape_cast %18 : vector<16xf32> to vector<16x1xf32>
    %20 = math.log %19 : vector<16x1xf32>
    %21 = arith.addf %14, %20 : vector<16x1xf32>
    %22 = tpu.iota {dimensions = array<i32: 1>} : vector<16x128xi32>
    %c0_10 = arith.constant 0 : index
    %c0_11 = arith.constant 0 : index
    %23 = vector.load %arg1[%c0_10, %c0_11] : memref<16x1xi32, #tpu.memory_space<vmem>>, vector<16x1xi32>
    %24 = vector.broadcast %23 : vector<16x1xi32> to vector<16x128xi32>
    %25 = arith.cmpi eq, %22, %24 : vector<16x128xi32>
    %cst_12 = arith.constant 0.000000e+00 : f32
    %26 = vector.broadcast %cst_12 : f32 to vector<16x128xf32>
    %27 = arith.select %25, %12, %26 : vector<16x128xi1>, vector<16x128xf32>
    %28 = vector.shape_cast %21 : vector<16x1xf32> to vector<1x16x1xf32>
    %cst_13 = arith.constant dense<0.000000e+00> : vector<1xf32>
    %29 = vector.multi_reduction <add>, %28, %cst_13 [1, 2] : vector<1x16x1xf32> to vector<1xf32>
    %30 = vector.shape_cast %29 : vector<1xf32> to vector<1x1x1xf32>
    %31 = vector.extract %30[0, 0, 0] : f32 from vector<1x1x1xf32>
    %32 = vector.shape_cast %27 : vector<16x128xf32> to vector<1x16x128xf32>
    %cst_14 = arith.constant dense<0.000000e+00> : vector<1xf32>
    %33 = vector.multi_reduction <add>, %32, %cst_14 [1, 2] : vector<1x16x128xf32> to vector<1xf32>
    %34 = vector.shape_cast %33 : vector<1xf32> to vector<1x1x1xf32>
    %35 = vector.extract %34[0, 0, 0] : f32 from vector<1x1x1xf32>
    %36 = arith.subf %31, %35 : f32
    %cst_15 = arith.constant 1.250000e-01 : f32
    %37 = arith.mulf %36, %cst_15 : f32
    %c0_16 = arith.constant 0 : index
    %c0_17 = arith.constant 0 : index
    %38 = memref.load %arg4[%c0_16, %c0_17] : memref<1x1xf32, #tpu.memory_space<smem>>
    memref.store %37, %arg4[%c0_16, %c0_17] : memref<1x1xf32, #tpu.memory_space<smem>>
    return
  }
}

</mosaic_0001>

<bundles_post_ra>
// kernel: _discriminator_loss_packed.1
= control target key start
LH: loop header
LB: loop body
LE: loop exit
PB: predicated region body
PF: predicated region fallthrough
CT: control target
= control target key end

     0   :  { %9 = vsyncpa [#allocation3], 0  ;;  %s565_s0 = inlined_call_operand.vmem [shape: bf16[16,128], index: 0, kind: input, shape index: {}]   ;;  %s566_s1 = inlined_call_operand.vmem [shape: s32[16,1], index: 1, kind: input, shape index: {}]   ;;  %s567_s2 = inlined_call_operand.hbm [shape: bf16[256,128], index: 2, kind: input, shape index: {}]   ;;  %s568_s3 = inlined_call_operand.vmem [shape: f32[2,128], index: 3, kind: input, shape index: {}]   ;;  %s569_s4 = inlined_call_operand.hbm [shape: f32[1,1], index: 4, kind: output, shape index: {}]  }
   0x1   :  { %10 = vsyncpa [#allocation4], 0  ;;  %s494_s15 = smov [#allocation2]   ;;  %s458_s19 = scalar_lea.hbm %s567_s2, 2048 }
   0x2   :  { %s20_s16 = sshll.u32 %s494_s15, 4  ;;  %p459_p0 = scmp.ne.s32.totalorder %s567_s2, %s458_s19  ;;  %s21_s16 = int_to_ptr.vmem [resolvable:$true] %s20_s16 }
   0x3   :  { %p462_p1 = scmp.lt.u32.totalorder %s458_s19, %s567_s2 }
   0x5   :  { %p464_p2 = pnand %p462_p1, %p459_p0 }
   0x7   :  { %467 = shalt.err (!%p464_p2)
}
   0x8   :  { %s468_s24 = scalar_lea.vmem %s21_s16, 2048  ;;  %p473_p4 = scmp.lt.s32.totalorder %s21_s16, %s21_s16 }
   0x9   :  { %p469_p3 = scmp.ne.s32.totalorder %s21_s16, %s468_s24  ;;  %p474_p5 = scmp.lt.s32.totalorder %s468_s24, %s468_s24 }
   0xb   :  { %p475_p6 = por %p474_p5, %p473_p4 }
   0xd   :  { %p476_p7 = pnand %p475_p6, %p469_p3 }
   0xf   :  { %479 = shalt.err (!%p476_p7)
}
  0x10   :  { %s495_s25 = smov 64   ;;  %s496_s26 = smov 4  }
  0x11   :  { %26 = dma.hbm_to_vmem [thread:$0]  %s567_s2, 2048, %s21_s16, [#allocation3], %s495_s25, %s495_s25, %s496_s26  }
  0x12   :  { %490 = dma.done.wait [#allocation3], 2048  }
  0x13   :  { %491 = vsyncadd [#allocation3], 4294965248  ;;  %v497_v0 = vmov 0.0   ;;  %vm498_vm0 = vmmov 0   ;;  %v429_v1 = vld [vmem:[#allocation2] sm:$0xff]   ;;  %v430_v2 = vld [vmem:[#allocation2 + $0x8] sm:$0xff]   ;;  %v284_v46 = vlaneseq }
  0x14   :  { %376 = vmatprep.subr.bf16.mxu0 %v497_v0  ;;  %392 = vmatprep.mubr.msk.bf16.mxu0 %vm498_vm0, %v497_v0  ;;  %v431_v3 = vld [vmem:[#allocation2 + $0x10] sm:$0xff]   ;;  %v438_v4 = vld [vmem:[#allocation2 + $0x40] sm:$0xff]   ;;  %v432_v5 = vld [vmem:[#allocation2 + $0x18] sm:$0xff]   ;;  %v499_v28 = vmov 0   ;;  %vm298_vm3 = vcmask 7168   ;;  %s480_s15 = scalar_lea.hbm %s569_s4, 16 }
  0x15   :  { %396 = vmatprep.subr.bf16.mxu1 %v497_v0  ;;  %412 = vmatprep.mubr.msk.bf16.mxu1 %vm498_vm0, %v497_v0  ;;  %v439_v6 = vld [vmem:[#allocation2 + $0x48] sm:$0xff]   ;;  %v433_v7 = vld [vmem:[#allocation2 + $0x20] sm:$0xff]   ;;  %v440_v8 = vld [vmem:[#allocation2 + $0x50] sm:$0xff]   ;;  %v285_v48 = vand.u32 127, %v284_v46  ;;  %p481_p8 = scmp.ne.s32.totalorder %s569_s4, %s480_s15  ;;  %p484_p9 = scmp.lt.u32.totalorder %s480_s15, %s569_s4 }
  0x16   :  { %377 = vmatpush3.bf16.msra.mxu0 %v429_v1  ;;  %397 = vmatpush3.bf16.msra.mxu1 %v438_v4  ;;  %v434_v9 = vld [vmem:[#allocation2 + $0x28] sm:$0xff]   ;;  %v441_v10 = vld [vmem:[#allocation2 + $0x58] sm:$0xff]   ;;  %v435_v11 = vld [vmem:[#allocation2 + $0x30] sm:$0xff]  }
  0x17   :  { %378 = vmatprep.subr.bf16.mxu0 %v497_v0  ;;  %398 = vmatprep.subr.bf16.mxu1 %v497_v0  ;;  %v436_v12 = vld [vmem:[#allocation2 + $0x38] sm:$0xff]   ;;  %v437_v13 = vld [vmem:[%s565_s0] sm:$0xff]   ;;  %v443_v15 = vld [vmem:[#allocation2 + $0x68] sm:$0xff]   ;;  %p486_p10 = pnand %p484_p9, %p481_p8 }
  0x18   :  { %v442_v14 = vld [vmem:[#allocation2 + $0x60] sm:$0xff]   ;;  %v444_v16 = vld [vmem:[#allocation2 + $0x70] sm:$0xff]   ;;  %v445_v17 = vld [vmem:[#allocation2 + $0x78] sm:$0xff]   ;;  %427 = vset.pattern.permute.xlu0 %v499_v28  ;;  %428 = vset.pattern.permute.xlu1 %v499_v28 }
  0x19   :  { %v339_v18 = vld [vmem:[%s568_s3] ss:$0 sm:$0xff]  ;;  %v349_v29 = vld [vmem:[%s568_s3 + $0x1] ss:$0 sm:$0xff]  ;;  %v287_v45 = vld [vmem:[%s566_s1 + $0x8] sm:$0xff] }
  0x1a   :  { %379 = vmatpush3.bf16.msra.mxu0 %v430_v2  ;;  %399 = vmatpush3.bf16.msra.mxu1 %v439_v6  ;;  %v286_v36 = vld [vmem:[%s566_s1] sm:$0xff] }
  0x1b   :  { %380 = vmatprep.subr.bf16.mxu0 %v497_v0  ;;  %400 = vmatprep.subr.bf16.mxu1 %v497_v0 }
  0x1e   :  { %381 = vmatpush3.bf16.msra.mxu0 %v431_v3  ;;  %401 = vmatpush3.bf16.msra.mxu1 %v440_v8 }
  0x1f   :  { %382 = vmatprep.subr.bf16.mxu0 %v497_v0  ;;  %402 = vmatprep.subr.bf16.mxu1 %v497_v0 }
  0x22   :  { %383 = vmatpush3.bf16.msra.mxu0 %v432_v5  ;;  %403 = vmatpush3.bf16.msra.mxu1 %v441_v10 }
  0x23   :  { %384 = vmatprep.subr.bf16.mxu0 %v497_v0  ;;  %404 = vmatprep.subr.bf16.mxu1 %v497_v0 }
  0x26   :  { %385 = vmatpush3.bf16.msra.mxu0 %v433_v7  ;;  %405 = vmatpush3.bf16.msra.mxu1 %v442_v14 }
  0x27   :  { %386 = vmatprep.subr.bf16.mxu0 %v497_v0  ;;  %406 = vmatprep.subr.bf16.mxu1 %v497_v0 }
  0x2a   :  { %387 = vmatpush3.bf16.msra.mxu0 %v434_v9  ;;  %407 = vmatpush3.bf16.msra.mxu1 %v443_v15 }
  0x2b   :  { %388 = vmatprep.subr.bf16.mxu0 %v497_v0  ;;  %408 = vmatprep.subr.bf16.mxu1 %v497_v0 }
  0x2e   :  { %389 = vmatpush3.bf16.msra.mxu0 %v435_v11  ;;  %409 = vmatpush3.bf16.msra.mxu1 %v444_v16 }
  0x2f   :  { %390 = vmatprep.subr.bf16.mxu0 %v497_v0  ;;  %410 = vmatprep.subr.bf16.mxu1 %v497_v0 }
  0x32   :  { %391 = vmatpush3.bf16.msra.mxu0 %v436_v12  ;;  %411 = vmatpush3.bf16.msra.mxu1 %v445_v17 }
  0x35   :  { %393 = vmatmul.mubr.bf16.vlgmr.msra.gmra.mrb[0].mxu0 %v437_v13 }
 0x108   :  { %v161_v19 = vpop.f32.mrb[0].mxu0 }
 0x109   :  { %v162_v20 = vadd.f32 %v339_v18, %v161_v19  ;;  %v394_v21 = vpop.f32.mrb[1].mxu0 }
 0x10a   :  { %v164_v22 = vpop.f32.mrb[2].mxu0 }
 0x10b   :  { %v165_v23 = vadd.f32 %v339_v18, %v164_v22  ;;  %v395_v24 = vpop.f32.mrb[3].mxu0  ;;  %446 = vtanh.f32 %v162_v20 }
 0x10d   :  { %448 = vtanh.f32 %v165_v23 }
 0x115   :  { %v447_v25 = vpop.eup %446 }
 0x117   :  { %v449_v26 = vpop.eup %448 }
 0x118   :  { %v170_v27 = vpack.c.bf16 %v449_v26, %v447_v25 }
 0x11a   :  { %413 = vmatmul.mubr.bf16.vlgmr.msra.gmra.mrb[0].mxu1 %v170_v27 }
 0x1ed   :  { %v257_v30 = vpop.f32.mrb[0].mxu1 }
 0x1ee   :  { %v258_v31 = vadd.f32 %v349_v29, %v257_v30  ;;  %v414_v32 = vpop.f32.mrb[1].mxu1 }
 0x1ef   :  { %v260_v33 = vpop.f32.mrb[2].mxu1 }
 0x1f0   :  { %264 = vmax.xlane.f32.xlu0 %v258_v31  ;;  %v415_v34 = vpop.f32.mrb[3].mxu1  ;;  %v261_v35 = vadd.f32 %v349_v29, %v260_v33 }
 0x1f4   :  { %266 = vmax.xlane.f32.xlu0 %v261_v35 }
 0x20a   :  { %289 = vperm.xlu0 %427, %v286_v36  }
 0x27d   :  { %v265_v37 = vpop.xlane.xlu0 %264 }
 0x27e   :  { %v268_v38 = vsub.f32 %v258_v31, %v265_v37 }
 0x280   :  { %v270_v39 = vmul.f32 1.442695, %v268_v38 }
 0x281   :  { %v267_v40 = vpop.xlane.xlu0 %266 }
 0x282   :  { %v269_v41 = vsub.f32 %v261_v35, %v267_v40  ;;  %450 = vpow2.f32 %v270_v39 }
 0x284   :  { %v272_v42 = vmul.f32 1.442695, %v269_v41 }
 0x286   :  { %452 = vpow2.f32 %v272_v42 }
 0x289   :  { %v290_v49 = vpop.permute.xlu0 %289 }
 0x28a   :  { %vm294_vm1 = vcmp.eq.s32.totalorder %v285_v48, %v290_v49 }
 0x28b   :  { %v296_v52 = vsel %vm294_vm1, %v258_v31, 0.0 }
 0x28c   :  { %v451_v43 = vpop.eup %450 }
 0x28d   :  { %274 = vadd.xlane.f32.xlu1 %v451_v43 }
 0x290   :  { %v453_v44 = vpop.eup %452 }
 0x291   :  { %276 = vadd.xlane.f32.xlu1 %v453_v44 }
 0x2a2   :  { %292 = vperm.xlu1 %428, %v287_v45  }
 0x31a   :  { %v275_v47 = vpop.xlane.xlu1 %274 }
 0x31b   :  { %454 = vlog2.f32 %v275_v47 }
 0x31e   :  { %v277_v50 = vpop.xlane.xlu1 %276 }
 0x31f   :  { %456 = vlog2.f32 %v277_v50 }
 0x322   :  { %v293_v51 = vpop.permute.xlu1 %292 }
 0x323   :  { %vm295_vm2 = vcmp.eq.s32.totalorder %v285_v48, %v293_v51 }
 0x324   :  { %v297_v53 = vsel %vm295_vm2, %v261_v35, 0.0 }
 0x325   :  { %v455_v54 = vpop.eup %454  ;;  %v311_v55 = vadd.f32 %v297_v53, %v296_v52 }
 0x326   :  { %v279_v56 = vmul.f32 0.6931472, %v455_v54 }
 0x327   :  { %312 = vadd.xlane.f32.xlu0 %v311_v55 }
 0x328   :  { %v282_v59 = vadd.f32 %v279_v56, %v265_v37 }
 0x329   :  { %v457_v57 = vpop.eup %456 }
 0x32a   :  { %v281_v58 = vmul.f32 0.6931472, %v457_v57  ;;  %v299_v61 = vsel %vm298_vm3, %v282_v59, 0.0 }
 0x32c   :  { %v283_v60 = vadd.f32 %v281_v58, %v267_v40 }
 0x32e   :  { %v300_v62 = vsel %vm298_vm3, %v283_v60, 0.0 }
 0x32f   :  { %v301_v63 = vadd.f32 %v300_v62, %v299_v61 }
 0x331   :  { %302 = vadd.xlane.f32.xlu1 %v301_v63 }
 0x3b4   :  { %v313_v0 = vpop.xlane.xlu0 %312 }
 0x3b5   :  { %v314_v1 = vrot.slane %v313_v0, 4 }
 0x3b7   :  { %v315_v2 = vadd.f32 %v314_v1, %v313_v0 }
 0x3b9   :  { %v316_v3 = vrot.slane %v315_v2, 2 }
 0x3bb   :  { %v317_v7 = vadd.f32 %v316_v3, %v315_v2 }
 0x3bd   :  { %v318_v10 = vrot.slane %v317_v7, 1 }
 0x3be   :  { %v303_v4 = vpop.xlane.xlu1 %302 }
 0x3bf   :  { %v304_v5 = vrot.slane %v303_v4, 4  ;;  %v319_v13 = vadd.f32 %v318_v10, %v317_v7 }
 0x3c1   :  { %v305_v6 = vadd.f32 %v304_v5, %v303_v4 }
 0x3c3   :  { %v306_v8 = vrot.slane %v305_v6, 2 }
 0x3c5   :  { %v307_v9 = vadd.f32 %v306_v8, %v305_v6 }
 0x3c7   :  { %v308_v11 = vrot.slane %v307_v9, 1 }
 0x3c9   :  { %v309_v12 = vadd.f32 %v308_v11, %v307_v9 }
 0x3cb   :  { %416 = vpush %v309_v12 }
 0x3cc   :  { %418 = vpush %v319_v13 }
 0x3fc   :  { %s417_s1 = spop %416 }
 0x3fd   :  { %s419_s10 = spop %418 }
 0x3fe   :  { %s321_s11 = ssub.f32 %s417_s1, %s419_s10 }
 0x400   :  { %s322_s12 = smul.f32 0.125, %s321_s11 }
 0x402   :  { %324 = sst [smem:[#allocation5]] %s322_s12 }
 0x403   :  { %489 = shalt.err (!%p486_p10)
}
 0x404   :  { %s500_s20 = smov [#allocation5]  }
 0x405   :  { %332 = dma.smem_to_hbm %s500_s20, 16, %s569_s4, [#allocation4]  }
 0x406   :  { %492 = dma.done.wait [#allocation4], 16  }
 0x407   :  { %493 = vsyncadd [#allocation4], 4294967280 }
 0x408   :  { %336 = sfence }
 0x409   :  { %337 = vsyncpa [#allocation3], 1 }
 0x40a   :  { %338 = vsyncpa [#allocation4], 1 }

</bundles_post_ra>
